<compile_context>
chip_gen: v5e
topology: v5e:2x2
jax: 0.10.0
libtpu: 0.0.40
codegen_flags: <defaults>
</compile_context>

<pallas_src>
import jax
import jax.numpy as jnp
from jax.experimental import pallas as pl
from jax.experimental.pallas import tpu as pltpu

# ----- small config consistent with the MixVPR module (scaled down) ----------
B = 2            # batch
C = 4            # in_channels
H = W = 16       # in_h, in_w
HW = H * W       # 256  (token length for the mixer)
OUT_CH = 8       # out_channels
OUT_ROWS = 4     # out_rows
OUT_DIM = OUT_CH * OUT_ROWS          # 32  (flattened descriptor width)
MIX_DEPTH = 1    # mix_depth
MLP_RATIO = 1    # mlp_ratio
HID = HW * MLP_RATIO
LN_EPS = 1e-5
L2_EPS = 1e-12


def mixvpr_kernel(x_ref, gamma_ref, beta_ref, w1t_ref, b1_ref, w2t_ref, b2_ref,
                  wcomb_ref, bcomb_ref, out_ref):
    x = x_ref[...]                                    # (B*C, HW) f32, batch-major rows
    inv_hw = jnp.float32(1.0 / HW)

    # ---- FeatureMixerLayer stack: x = x + W2(relu(W1(LN(x)))) ---------------
    for d in range(MIX_DEPTH):                        # static unroll (depth=1 here)
        mean = jnp.sum(x, axis=-1, keepdims=True) * inv_hw
        xc = x - mean
        var = jnp.sum(xc * xc, axis=-1, keepdims=True) * inv_hw   # two-pass variance
        xn = xc * jax.lax.rsqrt(var + LN_EPS)
        xn = xn * gamma_ref[d] + beta_ref[d]          # (B*C, HW) f32
        h = jnp.dot(xn.astype(jnp.bfloat16), w1t_ref[d],
                    preferred_element_type=jnp.float32) + b1_ref[d]
        h = jnp.maximum(h, 0.0)                       # (B*C, HID)
        x = x + jnp.dot(h.astype(jnp.bfloat16), w2t_ref[d],
                        preferred_element_type=jnp.float32) + b2_ref[d]

    # ---- composed channel_proj . row_proj, one lane-dense 128-wide matmul ----
    # y[b*C + c, c'*OUT_DIM + j] = sum_s x[b*C+c, s] * wc[j//4, c'] * wr[j%4, s]
    # Only the diagonal blocks c' == c contribute to the real output; the MXU
    # computes all 128 lanes anyway, so the off-diagonal work is free.
    y = jnp.dot(x.astype(jnp.bfloat16), wcomb_ref[...],
                preferred_element_type=jnp.float32)   # (B*C, C*OUT_DIM) = (8, 128)
    y3 = y.reshape(B, C, C * OUT_DIM)                 # lane dim untouched
    z = bcomb_ref[...]                                # (1, OUT_DIM)
    for c in range(C):                                # C-1 VPU adds (static slices)
        z = z + y3[:, c, c * OUT_DIM:(c + 1) * OUT_DIM]   # (B, OUT_DIM)

    # ---- L2 normalize each batch row (flattened descriptor) ------------------
    ss = jnp.sum(z * z, axis=-1, keepdims=True)
    out_ref[...] = (z * jax.lax.rsqrt(jnp.maximum(ss, L2_EPS * L2_EPS))
                    ).astype(out_ref.dtype)


def _full(shape):
    n = len(shape)
    return pl.BlockSpec(shape, lambda i, _n=n: (0,) * _n)


def mixvpr_forward(x, kparams):
    gamma, beta, w1t, b1, w2t, b2, wcomb, bcomb = kparams
    # NCHW -> (B*C, HW): natural contiguous flatten, no transpose / extra HBM pass.
    x_rows = x.reshape(B * C, HW)

    out = pl.pallas_call(
        mixvpr_kernel,
        out_shape=jax.ShapeDtypeStruct((B, OUT_DIM), jnp.float32),
        grid=(1,),
        in_specs=[
            _full((B * C, HW)),       # x (fused batch/channel rows, f32)
            _full(gamma.shape),       # LN gamma  (D, 1, HW)
            _full(beta.shape),        # LN beta   (D, 1, HW)
            _full(w1t.shape),         # W1^T      (D, HW, HID)  bf16
            _full(b1.shape),          # b1        (D, 1, HID)
            _full(w2t.shape),         # W2^T      (D, HID, HW)  bf16
            _full(b2.shape),          # b2        (D, 1, HW)
            _full(wcomb.shape),       # lane-concat composed proj (HW, C*OUT_DIM) bf16
            _full(bcomb.shape),       # composed proj bias        (1, OUT_DIM)
        ],
        out_specs=_full((B, OUT_DIM)),
        compiler_params=pltpu.CompilerParams(dimension_semantics=("arbitrary",)),
    )(x_rows, gamma, beta, w1t, b1, w2t, b2, wcomb, bcomb)
    return out


def ref_forward(x, raw):
    """Pure-JAX reference mirroring the PyTorch module forward (all f32)."""
    gamma, beta, w1, b1, w2, b2, wc, bc, wr, br = raw
    z = x.reshape(B, C, HW)
    for d in range(MIX_DEPTH):
        mean = z.mean(-1, keepdims=True)
        var = ((z - mean) ** 2).mean(-1, keepdims=True)
        zn = (z - mean) / jnp.sqrt(var + LN_EPS)
        zn = zn * gamma[d] + beta[d]
        h = jnp.maximum(jnp.einsum('bcs,ks->bck', zn, w1[d]) + b1[d], 0.0)
        z = z + jnp.einsum('bck,sk->bcs', h, w2[d]) + b2[d]
    y = jnp.einsum('bcs,oc->bos', z, wc) + bc[None, :, None]      # channel_proj
    r = jnp.einsum('bos,rs->bor', y, wr) + br[None, None, :]      # row_proj
    flat = r.reshape(B, -1)
    nrm = jnp.sqrt(jnp.sum(flat * flat, axis=-1, keepdims=True))
    return flat / jnp.maximum(nrm, L2_EPS)


def init_raw_params(key):
    ks = jax.random.split(key, 6)
    f32 = jnp.float32
    gamma = jnp.ones((MIX_DEPTH, HW), f32)
    beta = jnp.zeros((MIX_DEPTH, HW), f32)
    # trunc_normal_(std=0.02) for mixer Linear weights, zero biases
    w1 = 0.02 * jax.random.truncated_normal(ks[0], -2.0, 2.0, (MIX_DEPTH, HID, HW), f32)
    b1 = jnp.zeros((MIX_DEPTH, HID), f32)
    w2 = 0.02 * jax.random.truncated_normal(ks[1], -2.0, 2.0, (MIX_DEPTH, HW, HID), f32)
    b2 = jnp.zeros((MIX_DEPTH, HW), f32)
    # channel_proj / row_proj: deterministic synthetic init
    wc = 0.05 * jax.random.normal(ks[2], (OUT_CH, C), f32)
    bc = 0.05 * jax.random.normal(ks[3], (OUT_CH,), f32)
    wr = 0.05 * jax.random.normal(ks[4], (OUT_ROWS, HW), f32)
    br = 0.05 * jax.random.normal(ks[5], (OUT_ROWS,), f32)
    return (gamma, beta, w1, b1, w2, b2, wc, bc, wr, br)


def to_kernel_params(raw):
    gamma, beta, w1, b1, w2, b2, wc, bc, wr, br = raw
    gamma_k = gamma[:, None, :]                                  # (D, 1, HW)
    beta_k = beta[:, None, :]
    w1t = jnp.transpose(w1, (0, 2, 1)).astype(jnp.bfloat16)      # (D, HW, HID)
    b1_k = b1[:, None, :]                                        # (D, 1, HID)
    w2t = jnp.transpose(w2, (0, 2, 1)).astype(jnp.bfloat16)      # (D, HID, HW)
    b2_k = b2[:, None, :]                                        # (D, 1, HW)
    # Lane-concatenated composed channel_proj . row_proj:
    #   wcomb[s, c*OUT_DIM + o*OUT_ROWS + r] = wc[o, c] * wr[r, s]
    wcomb = jnp.einsum('oc,rs->scor', wc, wr).reshape(HW, C * OUT_DIM)
    wcomb = wcomb.astype(jnp.bfloat16)
    #   bcomb[o*OUT_ROWS + r] = bc[o] * sum_s wr[r, s] + br[r]
    bcomb = (bc[:, None] * jnp.sum(wr, axis=-1)[None, :] + br[None, :]
             ).reshape(1, OUT_DIM)
    return (gamma_k, beta_k, w1t, b1_k, w2t, b2_k, wcomb, bcomb)


if __name__ == "__main__":
    key = jax.random.PRNGKey(0)
    k_param, k_x = jax.random.split(key)
    raw = init_raw_params(k_param)
    kparams = to_kernel_params(raw)
    x = jax.random.normal(k_x, (B, C, H, W), jnp.float32)

    out = jax.block_until_ready(mixvpr_forward(x, kparams))
    ref = jax.block_until_ready(ref_forward(x, raw))

    assert out.shape == (B, OUT_DIM)
    assert bool(jnp.all(jnp.isfinite(out)))
    # bf16 matmul operands (f32 accumulation) vs f32 reference -> modest tolerance
    assert jnp.allclose(out, ref, atol=2e-2, rtol=2e-2), float(jnp.max(jnp.abs(out - ref)))
    print("KERNEL_OK")
</pallas_src>

<mosaic_0001>
module attributes {stable_mosaic.version = 11 : i64} {
  func.func @mixvpr_kernel(%arg0: i32, %arg1: memref<8x256xf32, #tpu.memory_space<vmem>>, %arg2: memref<1x1x256xf32, #tpu.memory_space<vmem>>, %arg3: memref<1x1x256xf32, #tpu.memory_space<vmem>>, %arg4: memref<1x256x256xbf16, #tpu.memory_space<vmem>>, %arg5: memref<1x1x256xf32, #tpu.memory_space<vmem>>, %arg6: memref<1x256x256xbf16, #tpu.memory_space<vmem>>, %arg7: memref<1x1x256xf32, #tpu.memory_space<vmem>>, %arg8: memref<256x128xbf16, #tpu.memory_space<vmem>>, %arg9: memref<1x32xf32, #tpu.memory_space<vmem>>, %arg10: memref<2x32xf32, #tpu.memory_space<vmem>>) attributes {dimension_semantics = [#tpu.dimension_semantics<arbitrary>], iteration_bounds = array<i64: 1>, scalar_prefetch = 0 : i64, scratch_operands = 0 : i64, tpu.core_type = #tpu.core_type<tc>, window_params = [{pipeline_mode = #tpu.pipeline_mode<synchronous>, transform_indices = @transform_0, window_bounds = array<i64: 8, 256>}, {pipeline_mode = #tpu.pipeline_mode<synchronous>, transform_indices = @transform_1, window_bounds = array<i64: 1, 1, 256>}, {pipeline_mode = #tpu.pipeline_mode<synchronous>, transform_indices = @transform_2, window_bounds = array<i64: 1, 1, 256>}, {pipeline_mode = #tpu.pipeline_mode<synchronous>, transform_indices = @transform_3, window_bounds = array<i64: 1, 256, 256>}, {pipeline_mode = #tpu.pipeline_mode<synchronous>, transform_indices = @transform_4, window_bounds = array<i64: 1, 1, 256>}, {pipeline_mode = #tpu.pipeline_mode<synchronous>, transform_indices = @transform_5, window_bounds = array<i64: 1, 256, 256>}, {pipeline_mode = #tpu.pipeline_mode<synchronous>, transform_indices = @transform_6, window_bounds = array<i64: 1, 1, 256>}, {pipeline_mode = #tpu.pipeline_mode<synchronous>, transform_indices = @transform_7, window_bounds = array<i64: 256, 128>}, {pipeline_mode = #tpu.pipeline_mode<synchronous>, transform_indices = @transform_8, window_bounds = array<i64: 1, 32>}, {pipeline_mode = #tpu.pipeline_mode<synchronous>, transform_indices = @transform_9, window_bounds = array<i64: 2, 32>}]} {
    %c0 = arith.constant 0 : index
    %c0_0 = arith.constant 0 : index
    %0 = vector.load %arg1[%c0, %c0_0] : memref<8x256xf32, #tpu.memory_space<vmem>>, vector<8x256xf32>
    %cst = arith.constant dense<0.000000e+00> : vector<8xf32>
    %1 = vector.multi_reduction <add>, %0, %cst [1] : vector<8x256xf32> to vector<8xf32>
    %2 = vector.shape_cast %1 : vector<8xf32> to vector<8x1xf32>
    %cst_1 = arith.constant 3.906250e-03 : f32
    %3 = vector.broadcast %cst_1 : f32 to vector<8x1xf32>
    %4 = arith.mulf %2, %3 : vector<8x1xf32>
    %5 = vector.broadcast %4 : vector<8x1xf32> to vector<8x256xf32>
    %6 = arith.subf %0, %5 : vector<8x256xf32>
    %7 = arith.mulf %6, %6 : vector<8x256xf32>
    %cst_2 = arith.constant dense<0.000000e+00> : vector<8xf32>
    %8 = vector.multi_reduction <add>, %7, %cst_2 [1] : vector<8x256xf32> to vector<8xf32>
    %9 = vector.shape_cast %8 : vector<8xf32> to vector<8x1xf32>
    %cst_3 = arith.constant 3.906250e-03 : f32
    %10 = vector.broadcast %cst_3 : f32 to vector<8x1xf32>
    %11 = arith.mulf %9, %10 : vector<8x1xf32>
    %cst_4 = arith.constant 9.99999974E-6 : f32
    %12 = vector.broadcast %cst_4 : f32 to vector<8x1xf32>
    %13 = arith.addf %11, %12 : vector<8x1xf32>
    %14 = math.rsqrt %13 : vector<8x1xf32>
    %15 = vector.broadcast %14 : vector<8x1xf32> to vector<8x256xf32>
    %16 = arith.mulf %6, %15 : vector<8x256xf32>
    %c0_5 = arith.constant 0 : index
    %c0_6 = arith.constant 0 : index
    %c0_7 = arith.constant 0 : index
    %17 = vector.load %arg2[%c0_5, %c0_6, %c0_7] : memref<1x1x256xf32, #tpu.memory_space<vmem>>, vector<1x1x256xf32>
    %18 = vector.shape_cast %17 : vector<1x1x256xf32> to vector<1x256xf32>
    %19 = vector.broadcast %18 : vector<1x256xf32> to vector<8x256xf32>
    %20 = arith.mulf %16, %19 : vector<8x256xf32>
    %c0_8 = arith.constant 0 : index
    %c0_9 = arith.constant 0 : index
    %c0_10 = arith.constant 0 : index
    %21 = vector.load %arg3[%c0_8, %c0_9, %c0_10] : memref<1x1x256xf32, #tpu.memory_space<vmem>>, vector<1x1x256xf32>
    %22 = vector.shape_cast %21 : vector<1x1x256xf32> to vector<1x256xf32>
    %23 = vector.broadcast %22 : vector<1x256xf32> to vector<8x256xf32>
    %24 = arith.addf %20, %23 : vector<8x256xf32>
    %25 = arith.truncf %24 : vector<8x256xf32> to vector<8x256xbf16>
    %c0_11 = arith.constant 0 : index
    %c0_12 = arith.constant 0 : index
    %c0_13 = arith.constant 0 : index
    %26 = vector.load %arg4[%c0_11, %c0_12, %c0_13] : memref<1x256x256xbf16, #tpu.memory_space<vmem>>, vector<1x256x256xbf16>
    %27 = vector.shape_cast %26 : vector<1x256x256xbf16> to vector<256x256xbf16>
    %cst_14 = arith.constant dense<0.000000e+00> : vector<8x256xf32>
    %28 = tpu.matmul %25, %27, %cst_14 {dimension_numbers = #tpu.dot_dimension_numbers<[1], [0], [0], [1], [0, 0, 1, 1], [], []>} : vector<8x256xbf16>, vector<256x256xbf16>, vector<8x256xf32> -> vector<8x256xf32>
    %c0_15 = arith.constant 0 : index
    %c0_16 = arith.constant 0 : index
    %c0_17 = arith.constant 0 : index
    %29 = vector.load %arg5[%c0_15, %c0_16, %c0_17] : memref<1x1x256xf32, #tpu.memory_space<vmem>>, vector<1x1x256xf32>
    %30 = vector.shape_cast %29 : vector<1x1x256xf32> to vector<1x256xf32>
    %31 = vector.broadcast %30 : vector<1x256xf32> to vector<8x256xf32>
    %32 = arith.addf %28, %31 : vector<8x256xf32>
    %cst_18 = arith.constant 0.000000e+00 : f32
    %33 = vector.broadcast %cst_18 : f32 to vector<8x256xf32>
    %34 = arith.maximumf %32, %33 : vector<8x256xf32>
    %35 = arith.truncf %34 : vector<8x256xf32> to vector<8x256xbf16>
    %c0_19 = arith.constant 0 : index
    %c0_20 = arith.constant 0 : index
    %c0_21 = arith.constant 0 : index
    %36 = vector.load %arg6[%c0_19, %c0_20, %c0_21] : memref<1x256x256xbf16, #tpu.memory_space<vmem>>, vector<1x256x256xbf16>
    %37 = vector.shape_cast %36 : vector<1x256x256xbf16> to vector<256x256xbf16>
    %cst_22 = arith.constant dense<0.000000e+00> : vector<8x256xf32>
    %38 = tpu.matmul %35, %37, %cst_22 {dimension_numbers = #tpu.dot_dimension_numbers<[1], [0], [0], [1], [0, 0, 1, 1], [], []>} : vector<8x256xbf16>, vector<256x256xbf16>, vector<8x256xf32> -> vector<8x256xf32>
    %39 = arith.addf %0, %38 : vector<8x256xf32>
    %c0_23 = arith.constant 0 : index
    %c0_24 = arith.constant 0 : index
    %c0_25 = arith.constant 0 : index
    %40 = vector.load %arg7[%c0_23, %c0_24, %c0_25] : memref<1x1x256xf32, #tpu.memory_space<vmem>>, vector<1x1x256xf32>
    %41 = vector.shape_cast %40 : vector<1x1x256xf32> to vector<1x256xf32>
    %42 = vector.broadcast %41 : vector<1x256xf32> to vector<8x256xf32>
    %43 = arith.addf %39, %42 : vector<8x256xf32>
    %44 = arith.truncf %43 : vector<8x256xf32> to vector<8x256xbf16>
    %c0_26 = arith.constant 0 : index
    %c0_27 = arith.constant 0 : index
    %45 = vector.load %arg8[%c0_26, %c0_27] : memref<256x128xbf16, #tpu.memory_space<vmem>>, vector<256x128xbf16>
    %cst_28 = arith.constant dense<0.000000e+00> : vector<8x128xf32>
    %46 = tpu.matmul %44, %45, %cst_28 {dimension_numbers = #tpu.dot_dimension_numbers<[1], [0], [0], [1], [0, 0, 1, 1], [], []>} : vector<8x256xbf16>, vector<256x128xbf16>, vector<8x128xf32> -> vector<8x128xf32>
    %47 = vector.shape_cast %46 : vector<8x128xf32> to vector<2x4x128xf32>
    %c0_29 = arith.constant 0 : index
    %c0_30 = arith.constant 0 : index
    %48 = vector.load %arg9[%c0_29, %c0_30] : memref<1x32xf32, #tpu.memory_space<vmem>>, vector<1x32xf32>
    %49 = vector.extract_strided_slice %47 {offsets = [0, 0, 0], sizes = [2, 1, 32], strides = [1, 1, 1]} : vector<2x4x128xf32> to vector<2x1x32xf32>
    %50 = vector.shape_cast %49 : vector<2x1x32xf32> to vector<2x32xf32>
    %51 = vector.broadcast %48 : vector<1x32xf32> to vector<2x32xf32>
    %52 = arith.addf %51, %50 : vector<2x32xf32>
    %53 = vector.extract_strided_slice %47 {offsets = [0, 1, 32], sizes = [2, 1, 32], strides = [1, 1, 1]} : vector<2x4x128xf32> to vector<2x1x32xf32>
    %54 = vector.shape_cast %53 : vector<2x1x32xf32> to vector<2x32xf32>
    %55 = arith.addf %52, %54 : vector<2x32xf32>
    %56 = vector.extract_strided_slice %47 {offsets = [0, 2, 64], sizes = [2, 1, 32], strides = [1, 1, 1]} : vector<2x4x128xf32> to vector<2x1x32xf32>
    %57 = vector.shape_cast %56 : vector<2x1x32xf32> to vector<2x32xf32>
    %58 = arith.addf %55, %57 : vector<2x32xf32>
    %59 = vector.extract_strided_slice %47 {offsets = [0, 3, 96], sizes = [2, 1, 32], strides = [1, 1, 1]} : vector<2x4x128xf32> to vector<2x1x32xf32>
    %60 = vector.shape_cast %59 : vector<2x1x32xf32> to vector<2x32xf32>
    %61 = arith.addf %58, %60 : vector<2x32xf32>
    %62 = arith.mulf %61, %61 : vector<2x32xf32>
    %cst_31 = arith.constant dense<0.000000e+00> : vector<2xf32>
    %63 = vector.multi_reduction <add>, %62, %cst_31 [1] : vector<2x32xf32> to vector<2xf32>
    %64 = vector.shape_cast %63 : vector<2xf32> to vector<2x1xf32>
    %cst_32 = arith.constant 1.000000e-24 : f32
    %65 = vector.broadcast %cst_32 : f32 to vector<2x1xf32>
    %66 = arith.maximumf %64, %65 : vector<2x1xf32>
    %67 = math.rsqrt %66 : vector<2x1xf32>
    %68 = vector.broadcast %67 : vector<2x1xf32> to vector<2x32xf32>
    %69 = arith.mulf %61, %68 : vector<2x32xf32>
    %c0_33 = arith.constant 0 : index
    %c0_34 = arith.constant 0 : index
    %70 = vector.load %arg10[%c0_33, %c0_34] : memref<2x32xf32, #tpu.memory_space<vmem>>, vector<2x32xf32>
    tpu.vector_store %arg10[%c0_33, %c0_34], %69 {strides = array<i32>} : memref<2x32xf32, #tpu.memory_space<vmem>>, vector<2x32xf32>,
    return
  }
  func.func @transform_0(%arg0: i32) -> (i32, i32) {
    %c0_i32 = arith.constant 0 : i32
    %c0_i32_0 = arith.constant 0 : i32
    %c0_i32_1 = arith.constant 0 : i32
    return %c0_i32, %c0_i32_0 : i32, i32
  }
  func.func @transform_1(%arg0: i32) -> (i32, i32, i32) {
    %c0_i32 = arith.constant 0 : i32
    %c0_i32_0 = arith.constant 0 : i32
    %c0_i32_1 = arith.constant 0 : i32
    %c0_i32_2 = arith.constant 0 : i32
    return %c0_i32, %c0_i32_0, %c0_i32_1 : i32, i32, i32
  }
  func.func @transform_2(%arg0: i32) -> (i32, i32, i32) {
    %c0_i32 = arith.constant 0 : i32
    %c0_i32_0 = arith.constant 0 : i32
    %c0_i32_1 = arith.constant 0 : i32
    %c0_i32_2 = arith.constant 0 : i32
    return %c0_i32, %c0_i32_0, %c0_i32_1 : i32, i32, i32
  }
  func.func @transform_3(%arg0: i32) -> (i32, i32, i32) {
    %c0_i32 = arith.constant 0 : i32
    %c0_i32_0 = arith.constant 0 : i32
    %c0_i32_1 = arith.constant 0 : i32
    %c0_i32_2 = arith.constant 0 : i32
    return %c0_i32, %c0_i32_0, %c0_i32_1 : i32, i32, i32
  }
  func.func @transform_4(%arg0: i32) -> (i32, i32, i32) {
    %c0_i32 = arith.constant 0 : i32
    %c0_i32_0 = arith.constant 0 : i32
    %c0_i32_1 = arith.constant 0 : i32
    %c0_i32_2 = arith.constant 0 : i32
    return %c0_i32, %c0_i32_0, %c0_i32_1 : i32, i32, i32
  }
  func.func @transform_5(%arg0: i32) -> (i32, i32, i32) {
    %c0_i32 = arith.constant 0 : i32
    %c0_i32_0 = arith.constant 0 : i32
    %c0_i32_1 = arith.constant 0 : i32
    %c0_i32_2 = arith.constant 0 : i32
    return %c0_i32, %c0_i32_0, %c0_i32_1 : i32, i32, i32
  }
  func.func @transform_6(%arg0: i32) -> (i32, i32, i32) {
    %c0_i32 = arith.constant 0 : i32
    %c0_i32_0 = arith.constant 0 : i32
    %c0_i32_1 = arith.constant 0 : i32
    %c0_i32_2 = arith.constant 0 : i32
    return %c0_i32, %c0_i32_0, %c0_i32_1 : i32, i32, i32
  }
  func.func @transform_7(%arg0: i32) -> (i32, i32) {
    %c0_i32 = arith.constant 0 : i32
    %c0_i32_0 = arith.constant 0 : i32
    %c0_i32_1 = arith.constant 0 : i32
    return %c0_i32, %c0_i32_0 : i32, i32
  }
  func.func @transform_8(%arg0: i32) -> (i32, i32) {
    %c0_i32 = arith.constant 0 : i32
    %c0_i32_0 = arith.constant 0 : i32
    %c0_i32_1 = arith.constant 0 : i32
    return %c0_i32, %c0_i32_0 : i32, i32
  }
  func.func @transform_9(%arg0: i32) -> (i32, i32) {
    %c0_i32 = arith.constant 0 : i32
    %c0_i32_0 = arith.constant 0 : i32
    %c0_i32_1 = arith.constant 0 : i32
    return %c0_i32, %c0_i32_0 : i32, i32
  }
}

</mosaic_0001>

<bundles_post_ra>
// kernel: tpu_custom_call.1
= control target key start
LH: loop header
LB: loop body
LE: loop exit
PB: predicated region body
PF: predicated region fallthrough
CT: control target
= control target key end

     0   :  { %14 = vsyncpa [#allocation3], 0  ;;  %s1624_s0 = inlined_call_operand.hbm [shape: f32[8,256], index: 0, kind: input, shape index: {}]   ;;  %s1625_s1 = inlined_call_operand.hbm [shape: f32[1,1,256], index: 1, kind: input, shape index: {}]   ;;  %s1626_s2 = inlined_call_operand.hbm [shape: f32[1,1,256], index: 2, kind: input, shape index: {}]   ;;  %s1627_s3 = inlined_call_operand.hbm [shape: bf16[1,256,256], index: 3, kind: input, shape index: {}]   ;;  %s1628_s4 = inlined_call_operand.vmem [shape: f32[1,1,256], index: 4, kind: input, shape index: {}]   ;;  %s1629_s5 = inlined_call_operand.hbm [shape: bf16[1,256,256], index: 5, kind: input, shape index: {}]   ;;  %s1630_s6 = inlined_call_operand.vmem [shape: f32[1,1,256], index: 6, kind: input, shape index: {}]   ;;  %s1631_s7 = inlined_call_operand.hbm [shape: bf16[256,128], index: 7, kind: input, shape index: {}]   ;;  %s1632_s8 = inlined_call_operand.vmem [shape: f32[1,32], index: 8, kind: input, shape index: {}]   ;;  %s1633_s9 = inlined_call_operand.hbm [shape: f32[2,32], index: 9, kind: output, shape index: {}]  }
   0x1   :  { %15 = vsyncpa [#allocation6], 0 }
   0x2   :  { %16 = vsyncpa [#allocation9], 0 }
   0x3   :  { %17 = vsyncpa [#allocation12], 0  ;;  %s35_s11 = sshll.u32 %s1625_s1, 4  ;;  %s36_s11 = int_to_ptr.hbm [resolvable:$true] %s35_s11 }
   0x4   :  { %18 = vsyncpa [#allocation4], 0  ;;  %s1497_s12 = smov [#allocation5]   ;;  %s56_s16 = sshll.u32 %s1627_s3, 4  ;;  %s57_s16 = int_to_ptr.hbm [resolvable:$true] %s56_s16 }
   0x5   :  { %s37_s13 = sshll.u32 %s1497_s12, 4  ;;  %s1498_s17 = smov [#allocation8]   ;;  %s38_s13 = int_to_ptr.vmem [resolvable:$true] %s37_s13 }
   0x6   :  { %40 = dma.hbm_to_vmem [thread:$0]  %s36_s11, 32, %s38_s13, [#allocation6]  }
   0x7   :  { %s58_s18 = sshll.u32 %s1498_s17, 4  ;;  %s1499_s19 = smov 128   ;;  %s59_s18 = int_to_ptr.vmem [resolvable:$true] %s58_s18 }
   0x8   :  { %s1500_s20 = smov 8   ;;  %s24_s1 = sshll.u32 %s1624_s0, 4  ;;  %s25_s1 = int_to_ptr.hbm [resolvable:$true] %s24_s1 }
   0x9   :  { %64 = dma.hbm_to_vmem [thread:$0]  %s57_s16, 4096, %s59_s18, [#allocation9], %s1499_s19, %s1499_s19, %s1500_s20  }
   0xa   :  { %s1501_s23 = smov [#allocation2]   ;;  %s46_s3 = sshll.u32 %s1626_s2, 4  ;;  %s47_s3 = int_to_ptr.hbm [resolvable:$true] %s46_s3 }
   0xb   :  { %s26_s24 = sshll.u32 %s1501_s23, 4  ;;  %s1502_s27 = smov [#allocation7]   ;;  %s27_s24 = int_to_ptr.vmem [resolvable:$true] %s26_s24 }
   0xc   :  { %29 = dma.hbm_to_vmem [thread:$0]  %s25_s1, 256, %s27_s24, [#allocation3]  }
   0xd   :  { %s48_s28 = sshll.u32 %s1502_s27, 4  ;;  %s71_s10 = sshll.u32 %s1629_s5, 4  ;;  %s49_s28 = int_to_ptr.vmem [resolvable:$true] %s48_s28  ;;  %s72_s10 = int_to_ptr.hbm [resolvable:$true] %s71_s10 }
   0xe   :  { %51 = dma.hbm_to_vmem [thread:$0]  %s47_s3, 32, %s49_s28, [#allocation6]  }
   0xf   :  { %s86_s12 = sshll.u32 %s1631_s7, 4  ;;  %s1503_s13 = smov [#allocation10]   ;;  %s87_s12 = int_to_ptr.hbm [resolvable:$true] %s86_s12 }
  0x10   :  { %s73_s14 = sshll.u32 %s1503_s13, 4  ;;  %s1504_s2 = smov [#allocation11]   ;;  %s74_s14 = int_to_ptr.vmem [resolvable:$true] %s73_s14 }
  0x11   :  { %79 = dma.hbm_to_vmem [thread:$0]  %s72_s10, 4096, %s74_s14, [#allocation9], %s1499_s19, %s1499_s19, %s1500_s20  }
  0x12   :  { %s88_s15 = sshll.u32 %s1504_s2, 4  ;;  %s1505_s16 = smov 64   ;;  %s89_s15 = int_to_ptr.vmem [resolvable:$true] %s88_s15 }
  0x13   :  { %s1506_s17 = smov 4  }
  0x14   :  { %94 = dma.hbm_to_vmem [thread:$0]  %s87_s12, 2048, %s89_s15, [#allocation12], %s1505_s16, %s1505_s16, %s1506_s17  }
  0x15   :  { %1487 = dma.done.wait [#allocation3], 256  }
  0x16   :  { %1488 = vsyncadd [#allocation3], 4294967040 }
  0x17   :  { %1489 = dma.done.wait [#allocation6], 64  }
  0x18   :  { %1490 = vsyncadd [#allocation6], 4294967232 }
  0x19   :  { %1491 = dma.done.wait [#allocation9], 8192  }
  0x1a   :  { %1492 = vsyncadd [#allocation9], 4294959104 }
  0x1b   :  { %1493 = dma.done.wait [#allocation12], 2048  }
  0x1c   :  { %1494 = vsyncadd [#allocation12], 4294965248  ;;  %v1580_v0 = vld [vmem:[#allocation2] sm:$0xff]  ;;  %v1582_v1 = vld [vmem:[#allocation2 + $0x8] sm:$0xff]  ;;  %vm838_vm3 = vcmask 1041409   ;;  %s1508_s19 = smov 96  }
  0x1d   :  { %v123_v2 = vadd.f32 %v1582_v1, %v1580_v0  ;;  %v959_v3 = vld [vmem:[#allocation8 + $0x70] sm:$0xf]  ;;  %v1236_v4 = vld [vmem:[#allocation8 + $0x74] sm:$0xf0]  ;;  %v1235_v8 = vld [vmem:[#allocation8 + $0x74] sm:$0xf] }
  0x1e   :  { %v1023_v5 = vld [vmem:[#allocation8 + $0xf0] sm:$0xf]  ;;  %v960_v6 = vor.u32 %v1236_v4, %v959_v3  ;;  %v1252_v7 = vld [vmem:[#allocation8 + $0xf4] sm:$0xf0]  ;;  %v961_v9 = vld [vmem:[#allocation8 + $0x78] sm:$0xf0] }
  0x1f   :  { %124 = vadd.xlane.f32.xlu0 %v123_v2  ;;  %v1024_v10 = vor.u32 %v1252_v7, %v1023_v5  ;;  %v964_v11 = vor.u32 %v1235_v8, %v961_v9  ;;  %v1251_v12 = vld [vmem:[#allocation8 + $0xf4] sm:$0xf]  ;;  %v1025_v13 = vld [vmem:[#allocation8 + $0xf8] sm:$0xf0]  ;;  %v951_v22 = vld [vmem:[#allocation8 + $0x60] sm:$0xf] }
  0x20   :  { %364 = vmatpush.bf16.msra.mxu0 %v960_v6  ;;  %v1028_v14 = vor.u32 %v1251_v12, %v1025_v13  ;;  %v1234_v23 = vld [vmem:[#allocation8 + $0x64] sm:$0xf0]  ;;  %v1015_v24 = vld [vmem:[#allocation8 + $0xe0] sm:$0xf]  ;;  %v1233_v27 = vld [vmem:[#allocation8 + $0x64] sm:$0xf] }
  0x21   :  { %377 = vmatpush.bf16.msra.mxu1 %v1024_v10  ;;  %390 = vmatpush.bf16.msra.mxu2 %v964_v11  ;;  %v952_v25 = vor.u32 %v1234_v23, %v951_v22  ;;  %v1250_v26 = vld [vmem:[#allocation8 + $0xe4] sm:$0xf0]  ;;  %v953_v28 = vld [vmem:[#allocation8 + $0x68] sm:$0xf0]  ;;  %v1249_v31 = vld [vmem:[#allocation8 + $0xe4] sm:$0xf] }
  0x22   :  { %403 = vmatpush.bf16.msra.mxu3 %v1028_v14  ;;  %v1016_v29 = vor.u32 %v1250_v26, %v1015_v24  ;;  %v956_v30 = vor.u32 %v1233_v27, %v953_v28  ;;  %v1017_v32 = vld [vmem:[#allocation8 + $0xe8] sm:$0xf0]  ;;  %v943_v34 = vld [vmem:[#allocation8 + $0x50] sm:$0xf]  ;;  %v1232_v35 = vld [vmem:[#allocation8 + $0x54] sm:$0xf0] }
  0x23   :  { %v1020_v33 = vor.u32 %v1249_v31, %v1017_v32  ;;  %v1007_v36 = vld [vmem:[#allocation8 + $0xd0] sm:$0xf]  ;;  %v944_v37 = vor.u32 %v1232_v35, %v943_v34  ;;  %v1248_v38 = vld [vmem:[#allocation8 + $0xd4] sm:$0xf0]  ;;  %v1231_v39 = vld [vmem:[#allocation8 + $0x54] sm:$0xf] }
  0x24   :  { %365 = vmatpush.bf16.msra.mxu0 %v952_v25  ;;  %v945_v40 = vld [vmem:[#allocation8 + $0x58] sm:$0xf0]  ;;  %v1008_v41 = vor.u32 %v1248_v38, %v1007_v36  ;;  %v1247_v43 = vld [vmem:[#allocation8 + $0xd4] sm:$0xf]  ;;  %v935_v46 = vld [vmem:[#allocation8 + $0x40] sm:$0xf] }
  0x25   :  { %378 = vmatpush.bf16.msra.mxu1 %v1016_v29  ;;  %391 = vmatpush.bf16.msra.mxu2 %v956_v30  ;;  %v948_v42 = vor.u32 %v1231_v39, %v945_v40  ;;  %v1009_v44 = vld [vmem:[#allocation8 + $0xd8] sm:$0xf0]  ;;  %v1230_v47 = vld [vmem:[#allocation8 + $0x44] sm:$0xf0]  ;;  %v999_v48 = vld [vmem:[#allocation8 + $0xc0] sm:$0xf] }
  0x26   :  { %404 = vmatpush.bf16.msra.mxu3 %v1020_v33  ;;  %v1012_v45 = vor.u32 %v1247_v43, %v1009_v44  ;;  %v936_v49 = vor.u32 %v1230_v47, %v935_v46  ;;  %v1246_v50 = vld [vmem:[#allocation8 + $0xc4] sm:$0xf0]  ;;  %v1229_v51 = vld [vmem:[#allocation8 + $0x44] sm:$0xf]  ;;  %v937_v52 = vld [vmem:[#allocation8 + $0x48] sm:$0xf0] }
  0x27   :  { %v1000_v53 = vor.u32 %v1246_v50, %v999_v48  ;;  %v940_v54 = vor.u32 %v1229_v51, %v937_v52  ;;  %v1245_v55 = vld [vmem:[#allocation8 + $0xc4] sm:$0xf]  ;;  %v1001_v56 = vld [vmem:[#allocation8 + $0xc8] sm:$0xf0]  ;;  %v927_v58 = vld [vmem:[#allocation8 + $0x30] sm:$0xf] }
  0x28   :  { %366 = vmatpush.bf16.msra.mxu0 %v944_v37  ;;  %v1004_v57 = vor.u32 %v1245_v55, %v1001_v56  ;;  %v1228_v59 = vld [vmem:[#allocation8 + $0x34] sm:$0xf0]  ;;  %v991_v60 = vld [vmem:[#allocation8 + $0xb0] sm:$0xf]  ;;  %v1227_v63 = vld [vmem:[#allocation8 + $0x34] sm:$0xf] }
  0x29   :  { %379 = vmatpush.bf16.msra.mxu1 %v1008_v41  ;;  %392 = vmatpush.bf16.msra.mxu2 %v948_v42  ;;  %v928_v61 = vor.u32 %v1228_v59, %v927_v58  ;;  %v1244_v62 = vld [vmem:[#allocation8 + $0xb4] sm:$0xf0]  ;;  %v929_v2 = vld [vmem:[#allocation8 + $0x38] sm:$0xf0]  ;;  %v1243_v5 = vld [vmem:[#allocation8 + $0xb4] sm:$0xf] }
  0x2a   :  { %405 = vmatpush.bf16.msra.mxu3 %v1012_v45  ;;  %v992_v3 = vor.u32 %v1244_v62, %v991_v60  ;;  %v932_v4 = vor.u32 %v1227_v63, %v929_v2  ;;  %v993_v6 = vld [vmem:[#allocation8 + $0xb8] sm:$0xf0]  ;;  %v919_v8 = vld [vmem:[#allocation8 + $0x20] sm:$0xf]  ;;  %v1226_v9 = vld [vmem:[#allocation8 + $0x24] sm:$0xf0] }
  0x2b   :  { %v996_v7 = vor.u32 %v1243_v5, %v993_v6  ;;  %v983_v10 = vld [vmem:[#allocation8 + $0xa0] sm:$0xf]  ;;  %v920_v11 = vor.u32 %v1226_v9, %v919_v8  ;;  %v1242_v12 = vld [vmem:[#allocation8 + $0xa4] sm:$0xf0]  ;;  %v1225_v13 = vld [vmem:[#allocation8 + $0x24] sm:$0xf] }
  0x2c   :  { %367 = vmatpush.bf16.msra.mxu0 %v936_v49  ;;  %v921_v14 = vld [vmem:[#allocation8 + $0x28] sm:$0xf0]  ;;  %v911_v22 = vld [vmem:[#allocation8 + $0x10] sm:$0xf]  ;;  %v1224_v23 = vld [vmem:[#allocation8 + $0x14] sm:$0xf0] }
  0x2d   :  { %380 = vmatpush.bf16.msra.mxu1 %v1000_v53  ;;  %393 = vmatpush.bf16.msra.mxu2 %v940_v54  ;;  %v975_v24 = vld [vmem:[#allocation8 + $0x90] sm:$0xf]  ;;  %v912_v25 = vor.u32 %v1224_v23, %v911_v22  ;;  %v1240_v26 = vld [vmem:[#allocation8 + $0x94] sm:$0xf0]  ;;  %v1223_v27 = vld [vmem:[#allocation8 + $0x14] sm:$0xf] }
  0x2e   :  { %406 = vmatpush.bf16.msra.mxu3 %v1004_v57  ;;  %v913_v28 = vld [vmem:[#allocation8 + $0x18] sm:$0xf0]  ;;  %v976_v29 = vor.u32 %v1240_v26, %v975_v24  ;;  %v1239_v31 = vld [vmem:[#allocation8 + $0x94] sm:$0xf]  ;;  %v903_v33 = vld [vmem:[#allocation8] sm:$0xf] }
  0x2f   :  { %v916_v30 = vor.u32 %v1223_v27, %v913_v28  ;;  %v977_v32 = vld [vmem:[#allocation8 + $0x98] sm:$0xf0]  ;;  %v1222_v35 = vld [vmem:[#allocation8 + $0x4] sm:$0xf0]  ;;  %v967_v36 = vld [vmem:[#allocation8 + $0x80] sm:$0xf] }
  0x30   :  { %368 = vmatpush.bf16.msra.mxu0 %v928_v61  ;;  %v980_v34 = vor.u32 %v1239_v31, %v977_v32  ;;  %v1238_v37 = vld [vmem:[#allocation8 + $0x84] sm:$0xf0]  ;;  %v904_v38 = vor.u32 %v1222_v35, %v903_v33  ;;  %v1221_v39 = vld [vmem:[#allocation8 + $0x4] sm:$0xf]  ;;  %v905_v40 = vld [vmem:[#allocation8 + $0x8] sm:$0xf0] }
  0x31   :  { %381 = vmatpush.bf16.msra.mxu1 %v992_v3  ;;  %394 = vmatpush.bf16.msra.mxu2 %v932_v4  ;;  %v1237_v41 = vld [vmem:[#allocation8 + $0x84] sm:$0xf]  ;;  %v968_v42 = vor.u32 %v1238_v37, %v967_v36  ;;  %v908_v43 = vor.u32 %v1221_v39, %v905_v40  ;;  %v969_v44 = vld [vmem:[#allocation8 + $0x88] sm:$0xf0]  ;;  %v1087_v47 = vld [vmem:[#allocation10 + $0x70] sm:$0xf] }
  0x32   :  { %407 = vmatpush.bf16.msra.mxu3 %v996_v7  ;;  %v972_v45 = vor.u32 %v1237_v41, %v969_v44  ;;  %v1268_v48 = vld [vmem:[#allocation10 + $0x74] sm:$0xf0]  ;;  %v1267_v49 = vld [vmem:[#allocation10 + $0x74] sm:$0xf]  ;;  %v1089_v52 = vld [vmem:[#allocation10 + $0x78] sm:$0xf0] }
  0x33   :  { %v1088_v51 = vor.u32 %v1268_v48, %v1087_v47  ;;  %v1079_v53 = vld [vmem:[#allocation10 + $0x60] sm:$0xf]  ;;  %v1092_v54 = vor.u32 %v1267_v49, %v1089_v52  ;;  %v1266_v55 = vld [vmem:[#allocation10 + $0x64] sm:$0xf0]  ;;  %v1265_v56 = vld [vmem:[#allocation10 + $0x64] sm:$0xf] }
  0x34   :  { %369 = vmatpush.bf16.msra.mxu0 %v920_v11  ;;  %v1081_v57 = vld [vmem:[#allocation10 + $0x68] sm:$0xf0]  ;;  %v1080_v59 = vor.u32 %v1266_v55, %v1079_v53  ;;  %v1151_v60 = vld [vmem:[#allocation10 + $0xf0] sm:$0xf]  ;;  %v1284_v61 = vld [vmem:[#allocation10 + $0xf4] sm:$0xf0] }
  0x35   :  { %v1084_v62 = vor.u32 %v1265_v56, %v1081_v57  ;;  %v1152_v63 = vor.u32 %v1284_v61, %v1151_v60  ;;  %v1283_v2 = vld [vmem:[#allocation10 + $0xf4] sm:$0xf]  ;;  %v1153_v3 = vld [vmem:[#allocation10 + $0xf8] sm:$0xf0]  ;;  %v1071_v4 = vld [vmem:[#allocation10 + $0x50] sm:$0xf] }
  0x36   :  { %v1156_v5 = vor.u32 %v1283_v2, %v1153_v3  ;;  %v1264_v6 = vld [vmem:[#allocation10 + $0x54] sm:$0xf0]  ;;  %v1263_v7 = vld [vmem:[#allocation10 + $0x54] sm:$0xf]  ;;  %v1073_v8 = vld [vmem:[#allocation10 + $0x58] sm:$0xf0] }
  0x37   :  { %v1143_v9 = vld [vmem:[#allocation10 + $0xe0] sm:$0xf]  ;;  %v1281_v11 = vld [vmem:[#allocation10 + $0xe4] sm:$0xf]  ;;  %v1065_v22 = vld [vmem:[#allocation10 + $0x48] sm:$0xf0] }
  0x38   :  { %370 = vmatpush.bf16.msra.mxu0 %v912_v25  ;;  %v1135_v23 = vld [vmem:[#allocation10 + $0xd0] sm:$0xf]  ;;  %v1280_v24 = vld [vmem:[#allocation10 + $0xd4] sm:$0xf0]  ;;  %v1279_v25 = vld [vmem:[#allocation10 + $0xd4] sm:$0xf] }
  0x39   :  { %v1137_v26 = vld [vmem:[#allocation10 + $0xd8] sm:$0xf0]  ;;  %v1136_v27 = vor.u32 %v1280_v24, %v1135_v23  ;;  %v1055_v31 = vld [vmem:[#allocation10 + $0x30] sm:$0xf]  ;;  %v1127_v32 = vld [vmem:[#allocation10 + $0xc0] sm:$0xf] }
  0x3a   :  { %v1278_v33 = vld [vmem:[#allocation10 + $0xc4] sm:$0xf0]  ;;  %v1260_v36 = vld [vmem:[#allocation10 + $0x34] sm:$0xf0]  ;;  %v1277_v37 = vld [vmem:[#allocation10 + $0xc4] sm:$0xf] }
  0x3b   :  { %v1259_v39 = vld [vmem:[#allocation10 + $0x34] sm:$0xf]  ;;  %v1057_v40 = vld [vmem:[#allocation10 + $0x38] sm:$0xf0]  ;;  %v1047_v47 = vld [vmem:[#allocation10 + $0x20] sm:$0xf] }
  0x3c   :  { %371 = vmatpush.bf16.msra.mxu0 %v904_v38  ;;  %v1129_v38 = vld [vmem:[#allocation10 + $0xc8] sm:$0xf0]  ;;  %v1258_v48 = vld [vmem:[#allocation10 + $0x24] sm:$0xf0]  ;;  %v1257_v49 = vld [vmem:[#allocation10 + $0x24] sm:$0xf] }
  0x3d   :  { %v1132_v44 = vor.u32 %v1277_v37, %v1129_v38  ;;  %v148_v52 = vld [vmem:[#allocation5] sm:$0x3]  ;;  %v1048_v53 = vor.u32 %v1258_v48, %v1047_v47  ;;  %v156_v55 = vld [vmem:[#allocation7] sm:$0x3]  ;;  %v1113_v24 = vld [vmem:[#allocation10 + $0xa8] sm:$0xf0] }
  0x3e   :  { %v150_v57 = vperm.slane %v148_v52, 0  ;;  %v159_v2 = vperm.slane %v156_v55, 1  ;;  %v1095_v38 = vld [vmem:[#allocation10 + $0x80] sm:$0xf]  ;;  %v1299_v47 = vld [vmem:[#allocation11 + $0x70] sm:$0xff]  ;;  %v1290_v48 = vld [vmem:[#allocation11 + $0x28] sm:$0xff] }
  0x3f   :  { %vm864_vm4 = vcmask 254976   ;;  %s888_s24 = sshll.u32 %s1633_s9, 4  ;;  %s889_s24 = int_to_ptr.hbm [resolvable:$true] %s888_s24 }
  0x40   :  { %612 = vmatpush.bf16.msrb.mxu0 %v1088_v51 }
  0x44   :  { %613 = vmatpush.bf16.msrb.mxu0 %v1080_v59  ;;  %v151_v59 = vperm.slane %v148_v52, 1 }
  0x92   :  { %v125_v15 = vpop.xlane.xlu0 %124 }
  0x93   :  { %v126_v16 = vmul.f32 0.00390625, %v125_v15  ;;  %v984_v15 = vor.u32 %v1242_v12, %v983_v10  ;;  %v1282_v10 = vld [vmem:[#allocation10 + $0xe4] sm:$0xf0]  ;;  %v1072_v12 = vor.u32 %v1264_v6, %v1071_v4 }
  0x95   :  { %v1587_v17 = vsub.f32 %v1580_v0, %v126_v16  ;;  %v1590_v18 = vsub.f32 %v1582_v1, %v126_v16  ;;  %v924_v16 = vor.u32 %v1225_v13, %v921_v14  ;;  %382 = vmatpush.bf16.msra.mxu1 %v984_v15  ;;  %v1144_v13 = vor.u32 %v1282_v10, %v1143_v9  ;;  %v1145_v14 = vld [vmem:[#allocation10 + $0xe8] sm:$0xf0]  ;;  %v1063_v15 = vld [vmem:[#allocation10 + $0x40] sm:$0xf]  ;;  %v1276_v9 = vld [vmem:[#allocation10 + $0xb4] sm:$0xf0] }
  0x96   :  { %614 = vmatpush.bf16.msrb.mxu0 %v1072_v12  ;;  %v1275_v10 = vld [vmem:[#allocation10 + $0xb4] sm:$0xf] }
  0x97   :  { %v129_v19 = vmul.f32 %v1587_v17, %v1587_v17  ;;  %v130_v20 = vmul.f32 %v1590_v18, %v1590_v18  ;;  %395 = vmatpush.bf16.msra.mxu2 %v924_v16  ;;  %v1262_v16 = vld [vmem:[#allocation10 + $0x44] sm:$0xf0] }
  0x99   :  { %v131_v21 = vadd.f32 %v130_v20, %v129_v19  ;;  %v1241_v19 = vld [vmem:[#allocation8 + $0xa4] sm:$0xf]  ;;  %v985_v20 = vld [vmem:[#allocation8 + $0xa8] sm:$0xf0]  ;;  %383 = vmatpush.bf16.msra.mxu1 %v976_v29  ;;  %v1064_v29 = vor.u32 %v1262_v16, %v1063_v15  ;;  %v1041_v16 = vld [vmem:[#allocation10 + $0x18] sm:$0xf0] }
  0x9b   :  { %132 = vadd.xlane.f32.xlu0 %v131_v21  ;;  %v988_v21 = vor.u32 %v1241_v19, %v985_v20  ;;  %396 = vmatpush.bf16.msra.mxu2 %v916_v30  ;;  %v1076_v19 = vor.u32 %v1263_v7, %v1073_v8  ;;  %v1148_v20 = vor.u32 %v1281_v11, %v1145_v14  ;;  %v1119_v8 = vld [vmem:[#allocation10 + $0xb0] sm:$0xf]  ;;  %v1121_v11 = vld [vmem:[#allocation10 + $0xb8] sm:$0xf0]  ;;  %v1255_v14 = vld [vmem:[#allocation10 + $0x14] sm:$0xf] }
  0x9c   :  { %v1140_v30 = vor.u32 %v1279_v25, %v1137_v26  ;;  %615 = vmatpush.bf16.msrb.mxu0 %v1064_v29  ;;  %v1124_v12 = vor.u32 %v1275_v10, %v1121_v11  ;;  %v1031_v26 = vld [vmem:[#allocation10] sm:$0xf]  ;;  %v1287_v10 = vld [vmem:[#allocation11 + $0x10] sm:$0xff]  ;;  %v1286_v11 = vld [vmem:[#allocation11 + $0x8] sm:$0xff] }
  0x9d   :  { %408 = vmatpush.bf16.msra.mxu3 %v988_v21  ;;  %384 = vmatpush.bf16.msra.mxu1 %v968_v42  ;;  %v1261_v21 = vld [vmem:[#allocation10 + $0x44] sm:$0xf]  ;;  %v1128_v42 = vor.u32 %v1278_v33, %v1127_v32  ;;  %v1103_v32 = vld [vmem:[#allocation10 + $0x90] sm:$0xf]  ;;  %v1272_v33 = vld [vmem:[#allocation10 + $0x94] sm:$0xf0] }
  0x9e   :  { %v1068_v35 = vor.u32 %v1261_v21, %v1065_v22  ;;  %v1274_v21 = vld [vmem:[#allocation10 + $0xa4] sm:$0xf0]  ;;  %v1273_v22 = vld [vmem:[#allocation10 + $0xa4] sm:$0xf] }
  0x9f   :  { %397 = vmatpush.bf16.msra.mxu2 %v908_v43  ;;  %v1056_v43 = vor.u32 %v1260_v36, %v1055_v31  ;;  %v1116_v25 = vor.u32 %v1273_v22, %v1113_v24  ;;  %v1105_v36 = vld [vmem:[#allocation10 + $0x98] sm:$0xf0] }
  0xa1   :  { %409 = vmatpush.bf16.msra.mxu3 %v980_v34  ;;  %625 = vmatpush.bf16.msrb.mxu1 %v1152_v63 }
  0xa2   :  { %616 = vmatpush.bf16.msrb.mxu0 %v1056_v43 }
  0xa3   :  { %638 = vmatpush.bf16.msrb.mxu2 %v1092_v54 }
  0xa5   :  { %410 = vmatpush.bf16.msra.mxu3 %v972_v45  ;;  %626 = vmatpush.bf16.msrb.mxu1 %v1144_v13  ;;  %v1256_v13 = vld [vmem:[#allocation10 + $0x14] sm:$0xf0] }
  0xa6   :  { %617 = vmatpush.bf16.msrb.mxu0 %v1048_v53 }
  0xa7   :  { %639 = vmatpush.bf16.msrb.mxu2 %v1084_v62  ;;  %v158_v62 = vperm.slane %v156_v55, 0 }
  0xa9   :  { %651 = vmatpush.bf16.msrb.mxu3 %v1156_v5  ;;  %627 = vmatpush.bf16.msrb.mxu1 %v1136_v27  ;;  %v1254_v27 = vld [vmem:[#allocation10 + $0x4] sm:$0xf0] }
  0xaa   :  { %v1032_v29 = vor.u32 %v1254_v27, %v1031_v26 }
  0xab   :  { %640 = vmatpush.bf16.msrb.mxu2 %v1076_v19  ;;  %v1044_v19 = vor.u32 %v1255_v14, %v1041_v16  ;;  %v1293_v14 = vld [vmem:[#allocation11 + $0x40] sm:$0xff]  ;;  %v666_v16 = vld [vmem:[%s1630_s6] sm:$0x3]  ;;  %s1507_s6 = smov 32  }
  0xac   :  { %v668_v22 = vperm.slane %v666_v16, 0 }
  0xad   :  { %652 = vmatpush.bf16.msrb.mxu3 %v1148_v20  ;;  %628 = vmatpush.bf16.msrb.mxu1 %v1128_v42  ;;  %v1111_v20 = vld [vmem:[#allocation10 + $0xa0] sm:$0xf]  ;;  %v1097_v42 = vld [vmem:[#allocation10 + $0x88] sm:$0xf0] }
  0xae   :  { %v1112_v23 = vor.u32 %v1274_v21, %v1111_v20 }
  0xaf   :  { %641 = vmatpush.bf16.msrb.mxu2 %v1068_v35  ;;  %v1271_v35 = vld [vmem:[#allocation10 + $0x94] sm:$0xf] }
  0xb0   :  { %v1108_v37 = vor.u32 %v1271_v35, %v1105_v36 }
  0xb1   :  { %653 = vmatpush.bf16.msrb.mxu3 %v1140_v30  ;;  %v1033_v30 = vld [vmem:[#allocation10 + $0x8] sm:$0xf0] }
  0xb5   :  { %654 = vmatpush.bf16.msrb.mxu3 %v1132_v44  ;;  %v1292_v44 = vld [vmem:[#allocation11 + $0x38] sm:$0xff] }
  0xb9   :  { %655 = vmatpush.bf16.msrb.mxu3 %v1124_v12  ;;  %v1295_v12 = vld [vmem:[#allocation11 + $0x50] sm:$0xff] }
  0xbd   :  { %656 = vmatpush.bf16.msrb.mxu3 %v1116_v25 }
  0xc1   :  { %657 = vmatpush.bf16.msrb.mxu3 %v1108_v37 }
 0x10e   :  { %v133_v46 = vpop.xlane.xlu0 %132 }
 0x10f   :  { %v134_v50 = vmul.f32 0.00390625, %v133_v46  ;;  %v1060_v46 = vor.u32 %v1259_v39, %v1057_v40  ;;  %v1270_v39 = vld [vmem:[#allocation10 + $0x84] sm:$0xf0]  ;;  %v1269_v40 = vld [vmem:[#allocation10 + $0x84] sm:$0xf] }
 0x110   :  { %v1100_v43 = vor.u32 %v1269_v40, %v1097_v42 }
 0x111   :  { %v1596_v58 = vadd.f32 1e-05, %v134_v50  ;;  %v1049_v50 = vld [vmem:[#allocation10 + $0x28] sm:$0xf0]  ;;  %642 = vmatpush.bf16.msrb.mxu2 %v1060_v46  ;;  %v1291_v46 = vld [vmem:[#allocation11 + $0x30] sm:$0xff] }
 0x112   :  { %v1052_v56 = vor.u32 %v1257_v49, %v1049_v50  ;;  %658 = vmatpush.bf16.msrb.mxu3 %v1100_v43  ;;  %v1298_v49 = vld [vmem:[#allocation11 + $0x68] sm:$0xff] }
 0x113   :  { %1315 = vrsqrt.f32 %v1596_v58  ;;  %vm142_vm1 = vweird.f32 %v1596_v58  ;;  %v198_v50 = vld [vmem:[%s1628_s4] sm:$0x3] }
 0x114   :  { %v200_v52 = vperm.slane %v198_v50, 0 }
 0x115   :  { %643 = vmatpush.bf16.msrb.mxu2 %v1052_v56 }
 0x119   :  { %v1316_v28 = vpop.eup %1315  ;;  %644 = vmatpush.bf16.msrb.mxu2 %v1044_v19 }
 0x11a   :  { %v137_v34 = vmul.f32 %v1316_v28, %v1596_v58  ;;  %vm143_vm0 = vweird.f32 %v1316_v28 }
 0x11b   :  { %vm144_vm2 = vmor %vm142_vm1, %vm143_vm0 }
 0x11c   :  { %v138_v41 = vmul.f32 %v1316_v28, %v137_v34  ;;  %v1104_v34 = vor.u32 %v1272_v33, %v1103_v32 }
 0x11e   :  { %v139_v45 = vmul.f32 0.5, %v138_v41  ;;  %v1096_v41 = vor.u32 %v1270_v39, %v1095_v38 }
 0x120   :  { %v140_v51 = vsub.f32 1.5, %v139_v45  ;;  %v1300_v45 = vld [vmem:[#allocation11 + $0x78] sm:$0xff] }
 0x122   :  { %v141_v54 = vmul.f32 %v1316_v28, %v140_v51  ;;  %v1289_v51 = vld [vmem:[#allocation11 + $0x20] sm:$0xff] }
 0x124   :  { %v145_v60 = vsel %vm144_vm2, %v1316_v28, %v141_v54  ;;  %v1253_v28 = vld [vmem:[#allocation10 + $0x4] sm:$0xf] }
 0x125   :  { %v146_v61 = vmul.f32 %v145_v60, %v1587_v17  ;;  %v147_v63 = vmul.f32 %v145_v60, %v1590_v18  ;;  %v1120_v17 = vor.u32 %v1276_v9, %v1119_v8  ;;  %v1039_v18 = vld [vmem:[#allocation10 + $0x10] sm:$0xf]  ;;  %v1036_v31 = vor.u32 %v1253_v28, %v1033_v30  ;;  %v1288_v8 = vld [vmem:[#allocation11 + $0x18] sm:$0xff]  ;;  %v1297_v9 = vld [vmem:[#allocation11 + $0x60] sm:$0xff] }
 0x126   :  { %v1040_v15 = vor.u32 %v1256_v13, %v1039_v18  ;;  %v1285_v18 = vld [vmem:[#allocation11] sm:$0xff]  ;;  %v1294_v13 = vld [vmem:[#allocation11 + $0x48] sm:$0xff] }
 0x127   :  { %v154_v3 = vmul.f32 %v150_v57, %v146_v61  ;;  %v155_v4 = vmul.f32 %v151_v59, %v147_v63  ;;  %629 = vmatpush.bf16.msrb.mxu1 %v1120_v17  ;;  %645 = vmatpush.bf16.msrb.mxu2 %v1036_v31  ;;  %v201_v57 = vperm.slane %v198_v50, 1  ;;  %v1296_v17 = vld [vmem:[#allocation11 + $0x58] sm:$0xff] }
 0x128   :  { %618 = vmatpush.bf16.msrb.mxu0 %v1040_v15 }
 0x129   :  { %v162_v5 = vadd.f32 %v158_v62, %v154_v3  ;;  %v163_v6 = vadd.f32 %v159_v2, %v155_v4 }
 0x12b   :  { %v164_v58 = vpack.c.bf16 %v162_v5, %v162_v5  ;;  %v165_v7 = vpack.c.bf16 %v163_v6, %v163_v6  ;;  %630 = vmatpush.bf16.msrb.mxu1 %v1112_v23 }
 0x12c   :  { %619 = vmatpush.bf16.msrb.mxu0 %v1032_v29  ;;  %v669_v29 = vperm.slane %v666_v16, 1 }
 0x12d   :  { %372 = vmatmul.bf16.vlgmr.msra.gmra.mxu0 %v164_v58  ;;  %385 = vmatmul.bf16.vlgmr.msra.gmra.mxu1 %v165_v7 }
 0x12e   :  { %398 = vmatmul.bf16.vlgmr.msra.gmra.mxu2 %v164_v58  ;;  %411 = vmatmul.bf16.vlgmr.msra.gmra.mxu3 %v165_v7 }
 0x12f   :  { %631 = vmatpush.bf16.msrb.mxu1 %v1104_v34 }
 0x130   :  { %804 = vmatpush.bf16.msra.mxu0 %v1292_v44 }
 0x133   :  { %632 = vmatpush.bf16.msrb.mxu1 %v1096_v41 }
 0x134   :  { %805 = vmatpush.bf16.msra.mxu0 %v1291_v46 }
 0x137   :  { %817 = vmatpush.bf16.msra.mxu1 %v1300_v45 }
 0x138   :  { %806 = vmatpush.bf16.msra.mxu0 %v1290_v48 }
 0x13b   :  { %818 = vmatpush.bf16.msra.mxu1 %v1299_v47 }
 0x13c   :  { %807 = vmatpush.bf16.msra.mxu0 %v1289_v51 }
 0x13f   :  { %819 = vmatpush.bf16.msra.mxu1 %v1298_v49 }
 0x140   :  { %808 = vmatpush.bf16.msra.mxu0 %v1288_v8 }
 0x143   :  { %820 = vmatpush.bf16.msra.mxu1 %v1297_v9 }
 0x144   :  { %809 = vmatpush.bf16.msra.mxu0 %v1287_v10 }
 0x147   :  { %821 = vmatpush.bf16.msra.mxu1 %v1296_v17 }
 0x148   :  { %810 = vmatpush.bf16.msra.mxu0 %v1286_v11 }
 0x14b   :  { %822 = vmatpush.bf16.msra.mxu1 %v1295_v12 }
 0x14c   :  { %811 = vmatpush.bf16.msra.mxu0 %v1285_v18 }
 0x14f   :  { %823 = vmatpush.bf16.msra.mxu1 %v1294_v13 }
 0x153   :  { %824 = vmatpush.bf16.msra.mxu1 %v1293_v14 }
 0x1aa   :  { %v373_v53 = vpop.f32.mrf.mxu0  ;;  %v386_v54 = vpop.f32.mrf.mxu1 }
 0x1ab   :  { %v374_v55 = vadd.f32 %v373_v53, %v200_v52  ;;  %v1314_v53 = vld [vmem:[%s1632_s8] ss:$0 sm:$0xff]  ;;  %s1509_s8 = smov [#allocation13]  }
 0x1ac   :  { %s886_s22 = sshll.u32 %s1509_s8, 4  ;;  %s887_s22 = int_to_ptr.vmem [resolvable:$true] %s886_s22 }
 0x1ad   :  { %v387_v56 = vadd.f32 %v386_v54, %v374_v55 }
 0x1af   :  { %v416_v59 = vmax.f32 %v387_v56, 0.0 }
 0x1b1   :  { %v418_v60 = vpack.c.bf16 %v416_v59, %v416_v59  ;;  %v399_v61 = vpop.f32.mrf.mxu2  ;;  %v412_v62 = vpop.f32.mrf.mxu3 }
 0x1b2   :  { %v400_v63 = vadd.f32 %v399_v61, %v201_v57  ;;  %v375_v2 = vpop.f32.mrf.mxu0  ;;  %v388_v3 = vpop.f32.mrf.mxu1 }
 0x1b3   :  { %620 = vmatmul.bf16.vlgmr.msrb.gmra.mxu0 %v418_v60  ;;  %646 = vmatmul.bf16.vlgmr.msrb.gmra.mxu2 %v418_v60 }
 0x1b4   :  { %v413_v4 = vadd.f32 %v412_v62, %v400_v63 }
 0x1b6   :  { %v417_v5 = vmax.f32 %v413_v4, 0.0 }
 0x1b8   :  { %v419_v6 = vpack.c.bf16 %v417_v5, %v417_v5 }
 0x1b9   :  { %v401_v58 = vpop.f32.mrf.mxu2  ;;  %v414_v7 = vpop.f32.mrf.mxu3 }
 0x1ba   :  { %633 = vmatmul.bf16.vlgmr.msrb.gmra.mxu1 %v419_v6  ;;  %659 = vmatmul.bf16.vlgmr.msrb.gmra.mxu3 %v419_v6 }
 0x230   :  { %v621_v15 = vpop.f32.mrf.mxu0 }
 0x236   :  { %v647_v19 = vpop.f32.mrf.mxu2 }
 0x237   :  { %v634_v20 = vpop.f32.mrf.mxu1 }
 0x238   :  { %v635_v21 = vadd.f32 %v634_v20, %v621_v15  ;;  %v623_v23 = vpop.f32.mrf.mxu0 }
 0x23a   :  { %v664_v24 = vadd.f32 %v635_v21, %v1580_v0 }
 0x23c   :  { %v672_v25 = vadd.f32 %v668_v22, %v664_v24 }
 0x23d   :  { %v660_v26 = vpop.f32.mrf.mxu3 }
 0x23e   :  { %v674_v27 = vpack.c.bf16 %v672_v25, %v672_v25  ;;  %v661_v28 = vadd.f32 %v660_v26, %v647_v19  ;;  %v649_v30 = vpop.f32.mrf.mxu2 }
 0x23f   :  { %v636_v31 = vpop.f32.mrf.mxu1 }
 0x240   :  { %v665_v32 = vadd.f32 %v661_v28, %v1582_v1  ;;  %812 = vmatmul.bf16.vlgmr.msra.gmra.mxu0 %v674_v27 }
 0x242   :  { %v673_v33 = vadd.f32 %v669_v29, %v665_v32 }
 0x244   :  { %v675_v34 = vpack.c.bf16 %v673_v33, %v673_v33 }
 0x245   :  { %v662_v35 = vpop.f32.mrf.mxu3 }
 0x246   :  { %825 = vmatmul.bf16.vlgmr.msra.gmra.mxu1 %v675_v34 }
 0x2bd   :  { %v813_v36 = vpop.f32.mrf.mxu0 }
 0x2c3   :  { %v826_v37 = vpop.f32.mrf.mxu1 }
 0x2c4   :  { %v827_v38 = vadd.f32 %v826_v37, %v813_v36 }
 0x2c5   :  { %v815_v39 = vpop.f32.mrf.mxu0 }
 0x2c6   :  { %v831_v40 = vrot.slane %v827_v38, 4  ;;  %v856_v0 = vperm.slane %v827_v38, 3  ;;  %v842_v41 = vperm.slane %v827_v38, 1  ;;  %v836_v44 = vperm.slane %v827_v38, 0 }
 0x2c7   :  { %v849_v50 = vperm.slane %v827_v38, 2 }
 0x2c8   :  { %v857_v42 = vperm.slane %v831_v40, 3  ;;  %v843_v43 = vperm.slane %v831_v40, 1  ;;  %v837_v45 = vperm.slane %v831_v40, 0  ;;  %v850_v49 = vperm.slane %v831_v40, 2 }
 0x2ca   :  { %v858_v46 = vsel %vm838_vm3, %v857_v42, %v856_v0  ;;  %v844_v1 = vsel %vm838_vm3, %v843_v43, %v842_v41  ;;  %v839_v47 = vsel %vm838_vm3, %v837_v45, %v836_v44  ;;  %v851_v51 = vsel %vm838_vm3, %v850_v49, %v849_v50 }
 0x2cb   :  { %v828_v48 = vpop.f32.mrf.mxu1  ;;  %859 = vrot.lane.b32.xlu2 %v858_v46, %s1507_s6  ;;  %845 = vrot.lane.b32.xlu1 %v844_v1, %s1508_s19  ;;  %v841_v54 = vadd.f32 %v1314_v53, %v839_v47 }
 0x2d3   :  { %852 = vrot.lane.b32.xlu1 %v851_v51, %s1505_s16 }
 0x325   :  { %v860_v59 = vpop.permute.xlu2 %859 }
 0x33d   :  { %v846_v52 = vpop.permute.xlu1 %845 }
 0x33e   :  { %v848_v55 = vadd.f32 %v846_v52, %v841_v54 }
 0x345   :  { %v853_v56 = vpop.permute.xlu1 %852 }
 0x346   :  { %v855_v57 = vadd.f32 %v853_v56, %v848_v55 }
 0x348   :  { %v862_v60 = vadd.f32 %v860_v59, %v855_v57 }
 0x34a   :  { %v863_v61 = vmul.f32 %v862_v60, %v862_v60 }
 0x34c   :  { %v865_v62 = vsel %vm864_vm4, %v863_v61, 0.0 }
 0x34d   :  { %866 = vadd.xlane.f32.xlu2 %v865_v62 }
 0x3c0   :  { %v867_v63 = vpop.xlane.xlu2 %866 }
 0x3c1   :  { %v868_v2 = vmax.f32 %v867_v63, 1e-24 }
 0x3c3   :  { %1317 = vrsqrt.f32 %v868_v2  ;;  %vm875_vm6 = vweird.f32 %v868_v2 }
 0x3c9   :  { %v1318_v3 = vpop.eup %1317 }
 0x3ca   :  { %v870_v4 = vmul.f32 %v1318_v3, %v868_v2  ;;  %vm876_vm5 = vweird.f32 %v1318_v3 }
 0x3cb   :  { %vm877_vm7 = vmor %vm875_vm6, %vm876_vm5 }
 0x3cc   :  { %v871_v5 = vmul.f32 %v1318_v3, %v870_v4 }
 0x3ce   :  { %v872_v6 = vmul.f32 0.5, %v871_v5 }
 0x3d0   :  { %v873_v58 = vsub.f32 1.5, %v872_v6 }
 0x3d2   :  { %v874_v7 = vmul.f32 %v1318_v3, %v873_v58 }
 0x3d4   :  { %v878_v8 = vsel %vm877_vm7, %v1318_v3, %v874_v7 }
 0x3d5   :  { %v879_v9 = vmul.f32 %v878_v8, %v862_v60 }
 0x3d7   :  { %880 = vst.msk [vmem:[#allocation13] sm:$0x3] %vm864_vm4, %v879_v9 }
 0x3d8   :  { %891 = dma.vmem_to_hbm [thread:$0]  %s887_s22, 32, %s889_s24, [#allocation4]  }
 0x3d9   :  { %1495 = dma.done.wait [#allocation4], 32  }
 0x3da   :  { %1496 = vsyncadd [#allocation4], 4294967264 }
 0x3db   :  { %896 = vsyncpa [#allocation3], 1 }
 0x3dc   :  { %897 = vsyncpa [#allocation6], 1 }
 0x3dd   :  { %898 = vsyncpa [#allocation9], 1 }
 0x3de   :  { %899 = vsyncpa [#allocation12], 1 }
 0x3df   :  { %900 = vsyncpa [#allocation4], 1 }

</bundles_post_ra>
